<compile_context>
chip_gen: v7x
topology: tpu7x:2x2x1
jax: 0.10.0
libtpu: 0.0.40
codegen_flags: <defaults>
</compile_context>

<pallas_src>
import jax
import jax.numpy as jnp
from jax.experimental import pallas as pl
from jax.experimental.pallas import tpu as pltpu

_TB_MAX = 8192  # rows per grid step when B is large (multiple of 8)


def _make_pose_dis_kernel(n_batch: int, tb: int):
    inv_st = 1.0 / float(n_batch)       # mean over B norms (sizes & translations)
    inv_r = 1.0 / float(3 * n_batch)    # mean over 3*B norms (rotation columns)

    def kernel(s0_ref, s1_ref, t0_ref, t1_ref, r0_ref, r1_ref, o_ref):
        i = pl.program_id(0)

        @pl.when(i == 0)
        def _init():
            o_ref[...] = jnp.zeros_like(o_ref)

        ds = s0_ref[...] - s1_ref[...]          # (tb, 3)
        dt = t0_ref[...] - t1_ref[...]          # (tb, 3)
        dr = r0_ref[...] - r1_ref[...]          # (tb, 9)  row-major (i, j) -> lane 3*i + j

        # Per-row L2 norms for sizes / translations.
        norm_s = jnp.sqrt(jnp.sum(ds * ds, axis=1, keepdims=True))   # (tb, 1)
        norm_t = jnp.sqrt(jnp.sum(dt * dt, axis=1, keepdims=True))   # (tb, 1)

        # Rotation: column-wise sums of squares via static lane slices
        #   col_sq[:, j] = dR[:, j]^2 + dR[:, j+3]^2 + dR[:, j+6]^2
        sq_r = dr * dr                                               # (tb, 9)
        col_sq = sq_r[:, 0:3] + sq_r[:, 3:6] + sq_r[:, 6:9]          # (tb, 3)
        norm_r = jnp.sum(jnp.sqrt(col_sq), axis=1, keepdims=True)    # (tb, 1)

        per_row = (norm_s + norm_t) * inv_st + norm_r * inv_r        # (tb, 1)

        # Zero rows past the true batch size (partial last tile may hold garbage).
        row = jax.lax.broadcasted_iota(jnp.int32, (tb, 1), 0) + i * tb
        per_row = jnp.where(row < n_batch, per_row, 0.0)

        # Single final sublane reduce; accumulate into the resident output block.
        o_ref[...] += jnp.sum(per_row, axis=0, keepdims=True)        # (1, 1)

    return kernel


def _f32(x):
    return x if x.dtype == jnp.float32 else x.astype(jnp.float32)


def pose_dis_pallas(s0, t0, R0, s1, t1, R1):
    B = s0.shape[0]
    tb = B if B <= _TB_MAX else _TB_MAX
    grid = (pl.cdiv(B, tb),)

    s0 = _f32(s0)
    s1 = _f32(s1)
    t0 = _f32(t0)
    t1 = _f32(t1)
    r0 = _f32(R0).reshape(B, 9)      # contiguous, free reshape (no transpose)
    r1 = _f32(R1).reshape(B, 9)

    spec3 = pl.BlockSpec((tb, 3), lambda i: (i, 0))
    spec9 = pl.BlockSpec((tb, 9), lambda i: (i, 0))

    out = pl.pallas_call(
        _make_pose_dis_kernel(n_batch=B, tb=tb),
        grid=grid,
        in_specs=[spec3, spec3, spec3, spec3, spec9, spec9],
        out_specs=pl.BlockSpec((1, 1), lambda i: (0, 0)),
        out_shape=jax.ShapeDtypeStruct((1, 1), jnp.float32),
        compiler_params=pltpu.CompilerParams(
            dimension_semantics=("arbitrary",)),   # reduction axis (accumulator)
    )(s0, s1, t0, t1, r0, r1)
    return out[0, 0]


class SupervisedLoss:
    """JAX/Pallas port of model/rgb_diffusion_pose.py::SupervisedLoss (forward only)."""

    def __init__(self, cfg=None):
        self.cfg = cfg

    def __call__(self, end_points):
        s1 = end_points['pred_size1']
        t1 = end_points['pred_translation1']
        R1 = end_points['pred_rotation1']
        s = end_points['delta_size0']
        t = end_points['delta_translation0']
        R = end_points['delta_rotation0']
        return pose_dis_pallas(s1, t1, R1, s, t, R)


def _pose_dis_ref(s0, t0, R0, s1, t1, R1):
    dis_s = jnp.mean(jnp.linalg.norm(s0 - s1, axis=1))
    dis_t = jnp.mean(jnp.linalg.norm(t0 - t1, axis=1))
    dis_r = jnp.mean(jnp.linalg.norm(R0 - R1, axis=1))
    return dis_s + dis_t + dis_r


if __name__ == "__main__":
    B = 2
    key = jax.random.PRNGKey(0)
    k = jax.random.split(key, 6)
    end_points = {
        'pred_size1':         jax.random.normal(k[0], (B, 3), jnp.float32),
        'pred_translation1':  jax.random.normal(k[1], (B, 3), jnp.float32),
        'pred_rotation1':     jax.random.normal(k[2], (B, 3, 3), jnp.float32),
        'delta_size0':        jax.random.normal(k[3], (B, 3), jnp.float32),
        'delta_translation0': jax.random.normal(k[4], (B, 3), jnp.float32),
        'delta_rotation0':    jax.random.normal(k[5], (B, 3, 3), jnp.float32),
    }

    loss_fn = SupervisedLoss()
    loss = loss_fn(end_points)
    jax.block_until_ready(loss)

    ref = _pose_dis_ref(end_points['pred_size1'],
                        end_points['pred_translation1'],
                        end_points['pred_rotation1'],
                        end_points['delta_size0'],
                        end_points['delta_translation0'],
                        end_points['delta_rotation0'])
    assert jnp.allclose(loss, ref, rtol=1e-5, atol=1e-5), (loss, ref)
    print("KERNEL_OK")
</pallas_src>

<mosaic_0001>
module attributes {stable_mosaic.version = 11 : i64} {
  func.func @kernel(%arg0: i32, %arg1: memref<2x3xf32, #tpu.memory_space<vmem>>, %arg2: memref<2x3xf32, #tpu.memory_space<vmem>>, %arg3: memref<2x3xf32, #tpu.memory_space<vmem>>, %arg4: memref<2x3xf32, #tpu.memory_space<vmem>>, %arg5: memref<2x9xf32, #tpu.memory_space<vmem>>, %arg6: memref<2x9xf32, #tpu.memory_space<vmem>>, %arg7: memref<1x1xf32, #tpu.memory_space<vmem>>) attributes {dimension_semantics = [#tpu.dimension_semantics<arbitrary>], iteration_bounds = array<i64: 1>, scalar_prefetch = 0 : i64, scratch_operands = 0 : i64, tpu.core_type = #tpu.core_type<tc>, window_params = [{transform_indices = @transform_0, window_bounds = array<i64: 2, 3>}, {transform_indices = @transform_1, window_bounds = array<i64: 2, 3>}, {transform_indices = @transform_2, window_bounds = array<i64: 2, 3>}, {transform_indices = @transform_3, window_bounds = array<i64: 2, 3>}, {transform_indices = @transform_4, window_bounds = array<i64: 2, 9>}, {transform_indices = @transform_5, window_bounds = array<i64: 2, 9>}, {pipeline_mode = #tpu.pipeline_mode<synchronous>, transform_indices = @transform_6, window_bounds = array<i64: 1, 1>}]} {
    %c0_i32 = arith.constant 0 : i32
    %0 = arith.cmpi eq, %arg0, %c0_i32 : i32
    %1 = arith.extui %0 : i1 to i32
    %c0_i32_0 = arith.constant 0 : i32
    %2 = arith.cmpi ne, %1, %c0_i32_0 : i32
    scf.if %2 {
      %cst_23 = arith.constant 0.000000e+00 : f32
      %48 = vector.broadcast %cst_23 : f32 to vector<1x1xf32>
      %c0_24 = arith.constant 0 : index
      %c0_25 = arith.constant 0 : index
      %49 = vector.load %arg7[%c0_24, %c0_25] : memref<1x1xf32, #tpu.memory_space<vmem>>, vector<1x1xf32>
      tpu.vector_store %arg7[%c0_24, %c0_25], %48 {strides = array<i32>} : memref<1x1xf32, #tpu.memory_space<vmem>>, vector<1x1xf32>,
    } else {
    }
    %c0 = arith.constant 0 : index
    %c0_1 = arith.constant 0 : index
    %3 = vector.load %arg1[%c0, %c0_1] : memref<2x3xf32, #tpu.memory_space<vmem>>, vector<2x3xf32>
    %c0_2 = arith.constant 0 : index
    %c0_3 = arith.constant 0 : index
    %4 = vector.load %arg2[%c0_2, %c0_3] : memref<2x3xf32, #tpu.memory_space<vmem>>, vector<2x3xf32>
    %5 = arith.subf %3, %4 : vector<2x3xf32>
    %c0_4 = arith.constant 0 : index
    %c0_5 = arith.constant 0 : index
    %6 = vector.load %arg3[%c0_4, %c0_5] : memref<2x3xf32, #tpu.memory_space<vmem>>, vector<2x3xf32>
    %c0_6 = arith.constant 0 : index
    %c0_7 = arith.constant 0 : index
    %7 = vector.load %arg4[%c0_6, %c0_7] : memref<2x3xf32, #tpu.memory_space<vmem>>, vector<2x3xf32>
    %8 = arith.subf %6, %7 : vector<2x3xf32>
    %c0_8 = arith.constant 0 : index
    %c0_9 = arith.constant 0 : index
    %9 = vector.load %arg5[%c0_8, %c0_9] : memref<2x9xf32, #tpu.memory_space<vmem>>, vector<2x9xf32>
    %c0_10 = arith.constant 0 : index
    %c0_11 = arith.constant 0 : index
    %10 = vector.load %arg6[%c0_10, %c0_11] : memref<2x9xf32, #tpu.memory_space<vmem>>, vector<2x9xf32>
    %11 = arith.subf %9, %10 : vector<2x9xf32>
    %12 = arith.mulf %5, %5 : vector<2x3xf32>
    %cst = arith.constant dense<0.000000e+00> : vector<2xf32>
    %13 = vector.multi_reduction <add>, %12, %cst [1] : vector<2x3xf32> to vector<2xf32>
    %14 = vector.shape_cast %13 : vector<2xf32> to vector<2x1xf32>
    %15 = math.sqrt %14 : vector<2x1xf32>
    %16 = arith.mulf %8, %8 : vector<2x3xf32>
    %cst_12 = arith.constant dense<0.000000e+00> : vector<2xf32>
    %17 = vector.multi_reduction <add>, %16, %cst_12 [1] : vector<2x3xf32> to vector<2xf32>
    %18 = vector.shape_cast %17 : vector<2xf32> to vector<2x1xf32>
    %19 = math.sqrt %18 : vector<2x1xf32>
    %20 = arith.mulf %11, %11 : vector<2x9xf32>
    %21 = vector.extract_strided_slice %20 {offsets = [0, 0], sizes = [2, 3], strides = [1, 1]} : vector<2x9xf32> to vector<2x3xf32>
    %22 = vector.extract_strided_slice %20 {offsets = [0, 3], sizes = [2, 3], strides = [1, 1]} : vector<2x9xf32> to vector<2x3xf32>
    %23 = arith.addf %21, %22 : vector<2x3xf32>
    %24 = vector.extract_strided_slice %20 {offsets = [0, 6], sizes = [2, 3], strides = [1, 1]} : vector<2x9xf32> to vector<2x3xf32>
    %25 = arith.addf %23, %24 : vector<2x3xf32>
    %26 = math.sqrt %25 : vector<2x3xf32>
    %cst_13 = arith.constant dense<0.000000e+00> : vector<2xf32>
    %27 = vector.multi_reduction <add>, %26, %cst_13 [1] : vector<2x3xf32> to vector<2xf32>
    %28 = vector.shape_cast %27 : vector<2xf32> to vector<2x1xf32>
    %29 = arith.addf %15, %19 : vector<2x1xf32>
    %cst_14 = arith.constant 5.000000e-01 : f32
    %30 = vector.broadcast %cst_14 : f32 to vector<2x1xf32>
    %31 = arith.mulf %29, %30 : vector<2x1xf32>
    %cst_15 = arith.constant 0.166666672 : f32
    %32 = vector.broadcast %cst_15 : f32 to vector<2x1xf32>
    %33 = arith.mulf %28, %32 : vector<2x1xf32>
    %34 = arith.addf %31, %33 : vector<2x1xf32>
    %35 = tpu.iota {dimensions = array<i32: 0>} : vector<2x1xi32>
    %c2_i32 = arith.constant 2 : i32
    %36 = arith.muli %arg0, %c2_i32 : i32
    %37 = vector.broadcast %36 : i32 to vector<2x1xi32>
    %38 = arith.addi %35, %37 : vector<2x1xi32>
    %c2_i32_16 = arith.constant 2 : i32
    %39 = vector.broadcast %c2_i32_16 : i32 to vector<2x1xi32>
    %40 = arith.cmpi slt, %38, %39 : vector<2x1xi32>
    %cst_17 = arith.constant 0.000000e+00 : f32
    %41 = vector.broadcast %cst_17 : f32 to vector<2x1xf32>
    %42 = arith.select %40, %34, %41 : vector<2x1xi1>, vector<2x1xf32>
    %c0_18 = arith.constant 0 : index
    %c0_19 = arith.constant 0 : index
    %43 = vector.load %arg7[%c0_18, %c0_19] : memref<1x1xf32, #tpu.memory_space<vmem>>, vector<1x1xf32>
    %cst_20 = arith.constant dense<0.000000e+00> : vector<1xf32>
    %44 = vector.multi_reduction <add>, %42, %cst_20 [0] : vector<2x1xf32> to vector<1xf32>
    %45 = vector.shape_cast %44 : vector<1xf32> to vector<1x1xf32>
    %46 = arith.addf %43, %45 : vector<1x1xf32>
    %c0_21 = arith.constant 0 : index
    %c0_22 = arith.constant 0 : index
    %47 = vector.load %arg7[%c0_21, %c0_22] : memref<1x1xf32, #tpu.memory_space<vmem>>, vector<1x1xf32>
    tpu.vector_store %arg7[%c0_21, %c0_22], %46 {strides = array<i32>} : memref<1x1xf32, #tpu.memory_space<vmem>>, vector<1x1xf32>,
    return
  }
  func.func @transform_0(%arg0: i32) -> (i32, i32) {
    %c0_i32 = arith.constant 0 : i32
    %c0_i32_0 = arith.constant 0 : i32
    return %arg0, %c0_i32 : i32, i32
  }
  func.func @transform_1(%arg0: i32) -> (i32, i32) {
    %c0_i32 = arith.constant 0 : i32
    %c0_i32_0 = arith.constant 0 : i32
    return %arg0, %c0_i32 : i32, i32
  }
  func.func @transform_2(%arg0: i32) -> (i32, i32) {
    %c0_i32 = arith.constant 0 : i32
    %c0_i32_0 = arith.constant 0 : i32
    return %arg0, %c0_i32 : i32, i32
  }
  func.func @transform_3(%arg0: i32) -> (i32, i32) {
    %c0_i32 = arith.constant 0 : i32
    %c0_i32_0 = arith.constant 0 : i32
    return %arg0, %c0_i32 : i32, i32
  }
  func.func @transform_4(%arg0: i32) -> (i32, i32) {
    %c0_i32 = arith.constant 0 : i32
    %c0_i32_0 = arith.constant 0 : i32
    return %arg0, %c0_i32 : i32, i32
  }
  func.func @transform_5(%arg0: i32) -> (i32, i32) {
    %c0_i32 = arith.constant 0 : i32
    %c0_i32_0 = arith.constant 0 : i32
    return %arg0, %c0_i32 : i32, i32
  }
  func.func @transform_6(%arg0: i32) -> (i32, i32) {
    %c0_i32 = arith.constant 0 : i32
    %c0_i32_0 = arith.constant 0 : i32
    %c0_i32_1 = arith.constant 0 : i32
    return %c0_i32, %c0_i32_0 : i32, i32
  }
}

</mosaic_0001>

<bundles_post_ra>
// kernel: tpu_custom_call.1
= control target key start
LH: loop header
LB: loop body
LE: loop exit
PB: predicated region body
PF: predicated region fallthrough
CT: control target
= control target key end

     0   :  { %11 = vsyncpa [#allocation3], 0  ;;  %s275_s0 = inlined_call_operand.hbm [shape: f32[2,3], index: 0, kind: input, shape index: {}]   ;;  %s276_s1 = inlined_call_operand.vmem [shape: f32[2,3], index: 1, kind: input, shape index: {}]   ;;  %s277_s2 = inlined_call_operand.vmem [shape: f32[2,3], index: 2, kind: input, shape index: {}]   ;;  %s278_s3 = inlined_call_operand.vmem [shape: f32[2,3], index: 3, kind: input, shape index: {}]   ;;  %s279_s4 = inlined_call_operand.vmem [shape: f32[2,9], index: 4, kind: input, shape index: {}]   ;;  %s280_s5 = inlined_call_operand.vmem [shape: f32[2,9], index: 5, kind: input, shape index: {}]   ;;  %s281_s6 = inlined_call_operand.hbm [shape: f32[1,1], index: 6, kind: output, shape index: {}]  }
   0x1   :  { %12 = vsyncpa [#allocation4], 0  ;;  %s191_s21 = smov [#allocation2]   ;;  %s143_s25 = scalar_lea.hbm %s275_s0, 32 }
   0x2   :  { %s19_s22 = sshll.u32 %s191_s21, 4  ;;  %p144_p0 = scmp.ne.s32.totalorder %s275_s0, %s143_s25  ;;  %s20_s22 = int_to_ptr.vmem [resolvable:$true] %s19_s22 }
   0x3   :  { %p147_p1 = scmp.lt.u32.totalorder %s143_s25, %s275_s0 }
   0x5   :  { %p149_p2 = pnand %p147_p1, %p144_p0 }
   0x7   :  { %152 = shalt.err (!%p149_p2)
}
   0x8   :  { %s153_s30 = scalar_lea.vmem %s20_s22, 32  ;;  %p158_p4 = scmp.lt.s32.totalorder %s20_s22, %s20_s22 }
   0x9   :  { %p154_p3 = scmp.ne.s32.totalorder %s20_s22, %s153_s30  ;;  %p159_p5 = scmp.lt.s32.totalorder %s153_s30, %s153_s30 }
   0xb   :  { %p160_p6 = por %p159_p5, %p158_p4 }
   0xd   :  { %p161_p7 = pnand %p160_p6, %p154_p3 }
   0xf   :  { %164 = shalt.err (!%p161_p7)
}
  0x10   :  { %22 = dma.hbm_to_vmem [thread:$0]  %s275_s0, 32, %s20_s22, [#allocation3]  }
  0x11   :  { %187 = dma.done.wait [#allocation3], 32  }
  0x12   :  { %188 = vsyncadd [#allocation3], 4294967264  ;;  %v48_v0 = vld [vmem:[%s279_s4] sm:$0x3]  ;;  %vm52_vm0 = vcmask 17408   ;;  %s192_s4 = smov 125   ;;  %v98_v35 = vlaneseq }
  0x13   :  { %v49_v1 = vld [vmem:[%s280_s5] sm:$0x3]  ;;  %vm40_vm3 = vcmask 0   ;;  %v194_v24 = vmov 0.0   ;;  %vm106_vm9 = vcmask 1041408  }
  0x14   :  { %v42_v2 = vld [vmem:[#allocation2] sm:$0x3]  ;;  %v50_v3 = vsub.f32 %v48_v0, %v49_v1  ;;  %41 = vst.msk [vmem:[#allocation5] sm:$0x1] %vm40_vm3, %v194_v24  ;;  %v99_v39 = vshrl.u32 %v98_v35, 7 }
  0x15   :  { %v43_v4 = vld [vmem:[%s276_s1] sm:$0x3]  ;;  %s193_s1 = smov 122  }
  0x16   :  { %v45_v5 = vld [vmem:[%s277_s2] sm:$0x3]  ;;  %v44_v7 = vsub.f32 %v42_v2, %v43_v4  ;;  %v74_v9 = vmul.f32 %v50_v3, %v50_v3  ;;  %vm103_vm8 = vcmp.lt.s32.totalorder %v99_v39, 2  ;;  %s195_s2 = smov [#allocation5]  }
  0x17   :  { %v46_v6 = vld [vmem:[%s278_s3] sm:$0x3]  ;;  %s123_s3 = sshll.u32 %s195_s2, 4  ;;  %s124_s3 = int_to_ptr.vmem [resolvable:$true] %s123_s3 }
  0x18   :  { %v47_v8 = vsub.f32 %v45_v5, %v46_v6  ;;  %v51_v10 = vmul.f32 %v44_v7, %v44_v7  ;;  %76 = vrot.lane.b32.xlu0 %v74_v9, %s192_s4  ;;  %s165_s5 = scalar_lea.vmem %s124_s3, 16  ;;  %s169_s18 = scalar_lea.vmem %s124_s3, 32 }
  0x19   :  { %p166_p8 = scmp.ne.s32.totalorder %s124_s3, %s165_s5  ;;  %p170_p9 = scmp.lt.s32.totalorder %s124_s3, %s124_s3 }
  0x1a   :  { %v63_v11 = vmul.f32 %v47_v8, %v47_v8  ;;  %v53_v12 = vsel %vm52_vm0, %v51_v10, 0.0  ;;  %p171_p10 = scmp.lt.s32.totalorder %s169_s18, %s165_s5 }
  0x1b   :  { %54 = vadd.xlane.f32.xlu1 %v53_v12  ;;  %v105_v51 = vld [vmem:[#allocation5] sm:$0x1] }
  0x1c   :  { %v64_v13 = vsel %vm52_vm0, %v63_v11, 0.0  ;;  %80 = vrot.lane.b32.xlu0 %v74_v9, %s193_s1  ;;  %p172_p11 = por %p171_p10, %p170_p9 }
  0x1e   :  { %p173_p12 = pnand %p172_p11, %p166_p8 }
  0x1f   :  { %65 = vadd.xlane.f32.xlu1 %v64_v13 }
  0x8a   :  { %v77_v14 = vpop.permute.xlu0 %76 }
  0x8b   :  { %v79_v15 = vadd.f32 %v77_v14, %v74_v9 }
  0x8e   :  { %v81_v16 = vpop.permute.xlu0 %80 }
  0x8f   :  { %v83_v17 = vadd.f32 %v81_v16, %v79_v15 }
  0x91   :  { %137 = vrsqrt.f32 %v83_v17  ;;  %vm86_vm1 = vcmp.eq.f32.partialorder %v83_v17, inf  ;;  %v89_v20 = vand.u32 2147483648, %v83_v17  ;;  %vm88_vm2 = vcmp.eq.f32.partialorder %v83_v17, 0.0 }
  0x9b   :  { %v138_v18 = vpop.eup %137 }
  0x9c   :  { %v85_v19 = vmul.f32 %v138_v18, %v83_v17 }
  0x9e   :  { %v87_v21 = vsel %vm86_vm1, %v83_v17, %v85_v19 }
  0x9f   :  { %v90_v22 = vsel %vm88_vm2, %v89_v20, %v87_v21 }
  0xa0   :  { %v91_v23 = vsel %vm52_vm0, %v90_v22, 0.0 }
  0xa1   :  { %92 = vadd.xlane.f32.xlu0 %v91_v23 }
  0xa8   :  { %v55_v25 = vpop.xlane.xlu1 %54 }
  0xa9   :  { %139 = vrsqrt.f32 %v55_v25  ;;  %vm58_vm5 = vcmp.eq.f32.partialorder %v55_v25, inf  ;;  %v61_v32 = vand.u32 2147483648, %v55_v25  ;;  %vm60_vm6 = vcmp.eq.f32.partialorder %v55_v25, 0.0 }
  0xac   :  { %v66_v26 = vpop.xlane.xlu1 %65 }
  0xad   :  { %141 = vrsqrt.f32 %v66_v26  ;;  %vm69_vm4 = vcmp.eq.f32.partialorder %v66_v26, inf  ;;  %v72_v31 = vand.u32 2147483648, %v66_v26  ;;  %vm71_vm7 = vcmp.eq.f32.partialorder %v66_v26, 0.0 }
  0xb3   :  { %v140_v27 = vpop.eup %139 }
  0xb4   :  { %v57_v29 = vmul.f32 %v140_v27, %v55_v25 }
  0xb6   :  { %v59_v33 = vsel %vm58_vm5, %v55_v25, %v57_v29 }
  0xb7   :  { %v142_v28 = vpop.eup %141  ;;  %v62_v36 = vsel %vm60_vm6, %v61_v32, %v59_v33 }
  0xb8   :  { %v68_v30 = vmul.f32 %v142_v28, %v66_v26 }
  0xba   :  { %v70_v34 = vsel %vm69_vm4, %v66_v26, %v68_v30 }
  0xbb   :  { %v73_v37 = vsel %vm71_vm7, %v72_v31, %v70_v34 }
  0xbc   :  { %v94_v38 = vadd.f32 %v73_v37, %v62_v36 }
  0xbe   :  { %v95_v41 = vmul.f32 0.5, %v94_v38 }
 0x12e   :  { %v93_v40 = vpop.xlane.xlu0 %92 }
 0x12f   :  { %v96_v42 = vmul.f32 0.16666667, %v93_v40 }
 0x131   :  { %v97_v43 = vadd.f32 %v96_v42, %v95_v41 }
 0x133   :  { %v104_v44 = vsel %vm103_vm8, %v97_v43, 0.0 }
 0x134   :  { %v107_v45 = vsel %vm106_vm9, %v104_v44, 0.0 }
 0x135   :  { %v108_v46 = vrot.slane %v107_v45, 4 }
 0x137   :  { %v109_v47 = vadd.f32 %v108_v46, %v107_v45 }
 0x139   :  { %v110_v48 = vrot.slane %v109_v47, 2 }
 0x13b   :  { %v111_v49 = vadd.f32 %v110_v48, %v109_v47 }
 0x13d   :  { %v112_v50 = vrot.slane %v111_v49, 1 }
 0x13f   :  { %v113_v52 = vadd.f32 %v112_v50, %v111_v49 }
 0x141   :  { %v114_v53 = vadd.f32 %v113_v52, %v105_v51 }
 0x143   :  { %116 = vst.msk [vmem:[#allocation5] sm:$0x1] %vm40_vm3, %v114_v53 }
 0x144   :  { %176 = shalt.err (!%p173_p12)
}
 0x145   :  { %s177_s21 = scalar_lea.hbm %s281_s6, 16 }
 0x146   :  { %p178_p13 = scmp.ne.s32.totalorder %s281_s6, %s177_s21  ;;  %p181_p0 = scmp.lt.u32.totalorder %s177_s21, %s281_s6 }
 0x148   :  { %p183_p1 = pnand %p181_p0, %p178_p13 }
 0x14a   :  { %186 = shalt.err (!%p183_p1)
}
 0x14b   :  { %126 = dma.vmem_to_hbm [thread:$0]  %s124_s3, 16, %s281_s6, [#allocation4]  }
 0x14c   :  { %189 = dma.done.wait [#allocation4], 16  }
 0x14d   :  { %190 = vsyncadd [#allocation4], 4294967280 }
 0x14e   :  { %130 = vsyncpa [#allocation3], 1 }
 0x14f   :  { %131 = vsyncpa [#allocation4], 1 }

</bundles_post_ra>
